<compile_context>
chip_gen: v7x
topology: tpu7x:2x2x1
jax: 0.10.0
libtpu: 0.0.40
codegen_flags: <defaults>
</compile_context>

<pallas_src>
import functools

import jax
import jax.numpy as jnp
from jax import lax
from jax.experimental import pallas as pl
from jax.experimental.pallas import tpu as pltpu

EPS = 1e-5
LANE = 128


def _round_up(x, m):
    return (x + m - 1) // m * m


# --------------------------------- kernel -----------------------------------
def _bottleneck_kernel(x_ref, w1_ref, b1_ref, w2_ref, b2_ref, w3_ref, b3_ref,
                       o_ref):
    """One (image, row-tile) grid step.

    x_ref : (1, H+2, W+2, Cp)  spatially zero-padded, channel-padded, bf16
    w*_ref: BN-scale-folded weights, channel-padded, bf16
            w1 (Cp, Cm), w2 (9*Cm, Cm), w3 (Cm, Cp)
    b*_ref: folded BN biases, f32, shapes (1, Cm)/(1, Cm)/(1, Cp)
    o_ref : (1, TH, W, Cp)
    """
    _, Hp, Wp, Cp = x_ref.shape
    _, TH, W, _ = o_ref.shape
    Cm = w1_ref.shape[1]
    H = Hp - 2
    mm_dtype = w1_ref.dtype

    r0 = pl.program_id(1) * TH          # first halo row (padded-image coords)

    # ---- conv1 (1x1, BN scale folded into weights) + bias + relu ------------
    # Computed over the TH+2 halo rows so conv2 sees real neighbor-row values.
    x_slab = x_ref[0, pl.ds(r0, TH + 2), :, :]                # (TH+2, Wp, Cp)
    y1 = jnp.dot(x_slab.reshape((TH + 2) * Wp, Cp), w1_ref[...],
                 preferred_element_type=jnp.float32)
    y1 = jnp.maximum(y1 + b1_ref[...], 0.0).reshape(TH + 2, Wp, Cm)

    # conv2 zero-pads *y1*, not x: positions that were spatial padding of x
    # picked up relu(bias1) above, force them back to zero.
    rows = lax.broadcasted_iota(jnp.int32, (TH + 2, Wp, 1), 0) + r0
    cols = lax.broadcasted_iota(jnp.int32, (TH + 2, Wp, 1), 1)
    valid = (rows >= 1) & (rows <= H) & (cols >= 1) & (cols <= W)
    y1 = jnp.where(valid, y1, 0.0).astype(mm_dtype)

    # ---- conv2 (3x3) as one im2col matmul: (TH*W, 9*Cm) @ (9*Cm, Cm) --------
    # Patch channel ordering is (ky*3+kx)*Cm + cin, matching w2_ref's rows.
    ycols = jnp.concatenate([y1[:, dx:dx + W, :] for dx in range(3)], axis=-1)
    patches = jnp.concatenate([ycols[dy:dy + TH, :, :] for dy in range(3)],
                              axis=-1).reshape(TH * W, 9 * Cm)
    y2 = jnp.dot(patches, w2_ref[...], preferred_element_type=jnp.float32)
    y2 = jnp.maximum(y2 + b2_ref[...], 0.0).astype(mm_dtype)

    # ---- conv3 (1x1, BN scale folded) + bias + identity residual + relu -----
    y3 = jnp.dot(y2, w3_ref[...], preferred_element_type=jnp.float32)
    res = x_slab[1:TH + 1, 1:W + 1, :].reshape(TH * W, Cp).astype(jnp.float32)
    out = jnp.maximum(y3 + b3_ref[...] + res, 0.0)
    o_ref[0] = out.reshape(TH, W, Cp).astype(o_ref.dtype)


# --------------------------------- wrapper ----------------------------------
def _fold_bn(bn):
    gamma, beta, mean, var = bn
    scale = gamma / jnp.sqrt(var + EPS)
    return scale, beta - mean * scale


def bottleneck_pallas(x_nchw, params, *, row_tile=None,
                      compute_dtype=jnp.bfloat16):
    """Bottleneck(inplanes, planes, stride=1, downsample=None) forward.

    x_nchw : (N, Cin, H, W) with Cin == 4 * planes (PyTorch NCHW layout).
    params : torch-layout weights {conv1, conv2, conv3 (OIHW, bias-free),
             bn1/bn2/bn3 = (gamma, beta, running_mean, running_var)}.
    """
    N, Cin, H, W = x_nchw.shape
    Cmid = params["conv1"].shape[0]
    assert params["conv1"].shape == (Cmid, Cin, 1, 1)
    assert params["conv2"].shape == (Cmid, Cmid, 3, 3)
    assert params["conv3"].shape == (Cin, Cmid, 1, 1)
    assert Cin == 4 * Cmid, (
        "kernel implements the stride=1 / no-downsample Bottleneck "
        "(inplanes == planes * expansion)")

    Cp = _round_up(Cin, LANE)      # lane-dense residual / output channels
    Cm = _round_up(Cmid, LANE)     # lane-dense mid channels

    if row_tile is None:
        row_tile = next(t for t in range(min(H, 16), 0, -1) if H % t == 0)
    assert H % row_tile == 0

    # Per-step VMEM budget: double-buffered x/out blocks + folded weights +
    # f32/bf16 intermediates.  Keep well under the 32 MiB scoped default so the
    # same tiling also fits v7x (64 MiB physical VMEM) without special flags.
    vmem_est = (2 * (H + 2) * (W + 2) * Cp * 2            # x block (bf16), 2-buf
                + 2 * row_tile * W * Cp * 2               # out block (bf16), 2-buf
                + (Cp * Cm + 9 * Cm * Cm + Cm * Cp) * 2   # folded weights (bf16)
                + (row_tile + 2) * (W + 2) * Cm * 4       # y1 (f32)
                + row_tile * W * 9 * Cm * 2               # im2col patches (bf16)
                + row_tile * W * (2 * Cm + 2 * Cp) * 4)   # y2/y3/res/out (f32)
    assert vmem_est < 24 * 1024 * 1024, \
        "tile too large for VMEM; shrink row_tile"

    s1, bias1 = _fold_bn(params["bn1"])
    s2, bias2 = _fold_bn(params["bn2"])
    s3, bias3 = _fold_bn(params["bn3"])

    # Fold BN scales into the conv weights and pad channel axes to 128 lanes.
    w1 = (params["conv1"][:, :, 0, 0] * s1[:, None]).T           # (Cin, Cmid)
    w1p = jnp.zeros((Cp, Cm), jnp.float32).at[:Cin, :Cmid].set(w1)

    w2 = params["conv2"] * s2[:, None, None, None]               # (O, I, 3, 3)
    w2 = jnp.transpose(w2, (2, 3, 1, 0))                         # (ky, kx, I, O)
    w2p = (jnp.zeros((3, 3, Cm, Cm), jnp.float32)
           .at[:, :, :Cmid, :Cmid].set(w2).reshape(9 * Cm, Cm))

    w3 = (params["conv3"][:, :, 0, 0] * s3[:, None]).T           # (Cmid, Cin)
    w3p = jnp.zeros((Cm, Cp), jnp.float32).at[:Cmid, :Cin].set(w3)

    b1p = jnp.zeros((1, Cm), jnp.float32).at[0, :Cmid].set(bias1)
    b2p = jnp.zeros((1, Cm), jnp.float32).at[0, :Cmid].set(bias2)
    b3p = jnp.zeros((1, Cp), jnp.float32).at[0, :Cin].set(bias3)

    w1p, w2p, w3p = (w.astype(compute_dtype) for w in (w1p, w2p, w3p))

    # NCHW -> NHWC, zero-pad spatially by 1 (3x3 halo) and channels to Cp.
    # TODO(synk): chained bottleneck blocks should stay in this padded-NHWC
    # bf16 layout so the HBM transposes/pads are paid once per network.
    x = jnp.transpose(x_nchw, (0, 2, 3, 1)).astype(compute_dtype)
    x = jnp.pad(x, ((0, 0), (1, 1), (1, 1), (0, Cp - Cin)))

    grid = (N, H // row_tile)
    rep = lambda a: pl.BlockSpec(a.shape, lambda n, r: (0, 0))

    flops = 2 * N * H * W * (Cp * Cm + 9 * Cm * Cm + Cm * Cp)
    bytes_accessed = int(
        x.size * x.dtype.itemsize
        + sum(int(a.size) * a.dtype.itemsize
              for a in (w1p, b1p, w2p, b2p, w3p, b3p))
        + N * H * W * Cp * jnp.dtype(compute_dtype).itemsize)

    out_nhwc = pl.pallas_call(
        _bottleneck_kernel,
        out_shape=jax.ShapeDtypeStruct((N, H, W, Cp), compute_dtype),
        grid_spec=pltpu.PrefetchScalarGridSpec(
            num_scalar_prefetch=0,
            grid=grid,
            in_specs=[
                # full padded image; block index constant across row tiles so
                # the DMA is skipped on consecutive row-tile steps.
                pl.BlockSpec((1, H + 2, W + 2, Cp), lambda n, r: (n, 0, 0, 0)),
                rep(w1p), rep(b1p), rep(w2p), rep(b2p), rep(w3p), rep(b3p),
            ],
            out_specs=pl.BlockSpec((1, row_tile, W, Cp),
                                   lambda n, r: (n, r, 0, 0)),
        ),
        compiler_params=pltpu.CompilerParams(
            dimension_semantics=("parallel", "parallel")),
        cost_estimate=pl.CostEstimate(flops=flops, transcendentals=0,
                                      bytes_accessed=bytes_accessed),
    )(x, w1p, b1p, w2p, b2p, w3p, b3p)

    out = out_nhwc[..., :Cin]
    return jnp.transpose(out, (0, 3, 1, 2)).astype(x_nchw.dtype)


# ----------------------------- pure-JAX reference ----------------------------
def bottleneck_ref(x_nchw, params):
    def conv(x, w, pad):
        return lax.conv_general_dilated(
            x, w, window_strides=(1, 1), padding=[(pad, pad), (pad, pad)],
            dimension_numbers=("NCHW", "OIHW", "NCHW"))

    def bn(x, p):
        gamma, beta, mean, var = p
        g = gamma.reshape(1, -1, 1, 1)
        b = beta.reshape(1, -1, 1, 1)
        m = mean.reshape(1, -1, 1, 1)
        v = var.reshape(1, -1, 1, 1)
        return (x - m) / jnp.sqrt(v + EPS) * g + b

    out = jax.nn.relu(bn(conv(x_nchw, params["conv1"], 0), params["bn1"]))
    out = jax.nn.relu(bn(conv(out, params["conv2"], 1), params["bn2"]))
    out = bn(conv(out, params["conv3"], 0), params["bn3"])
    return jax.nn.relu(out + x_nchw)


if __name__ == "__main__":
    key = jax.random.PRNGKey(0)
    ks = jax.random.split(key, 8)

    # Small shapes consistent with the module: inplanes = planes * expansion.
    N, planes, H, W = 2, 16, 8, 8
    inplanes = planes * 4          # 64

    conv1_w = 0.1 * jax.random.normal(ks[0], (planes, inplanes, 1, 1), jnp.float32)
    conv2_w = 0.1 * jax.random.normal(ks[1], (planes, planes, 3, 3), jnp.float32)
    conv3_w = 0.1 * jax.random.normal(ks[2], (planes * 4, planes, 1, 1), jnp.float32)

    def bn_params(k, c):
        k1, k2, k3, k4 = jax.random.split(k, 4)
        return (jax.random.uniform(k1, (c,), jnp.float32, 0.5, 1.5),
                0.1 * jax.random.normal(k2, (c,), jnp.float32),
                0.1 * jax.random.normal(k3, (c,), jnp.float32),
                jax.random.uniform(k4, (c,), jnp.float32, 0.5, 1.5))

    params = {"conv1": conv1_w, "conv2": conv2_w, "conv3": conv3_w,
              "bn1": bn_params(ks[3], planes),
              "bn2": bn_params(ks[4], planes),
              "bn3": bn_params(ks[5], planes * 4)}

    x = jax.random.normal(ks[6], (N, inplanes, H, W), jnp.float32)

    fn = jax.jit(functools.partial(bottleneck_pallas, params=params, row_tile=4))
    out = jax.block_until_ready(fn(x))

    ref = jax.block_until_ready(bottleneck_ref(x, params))
    assert out.shape == ref.shape == (N, inplanes, H, W)
    max_err = float(jnp.max(jnp.abs(out - ref)))
    # bf16 matmul operands + bf16 output store -> relaxed tolerance vs f32 ref.
    assert jnp.allclose(out, ref, atol=5e-2, rtol=5e-2), max_err

    print("KERNEL_OK")
</pallas_src>

<mosaic_0001>
module attributes {stable_mosaic.version = 11 : i64} {
  func.func @_bottleneck_kernel(%arg0: i32, %arg1: i32, %arg2: memref<1x10x10x128xbf16, #tpu.memory_space<vmem>>, %arg3: memref<128x128xbf16, #tpu.memory_space<vmem>>, %arg4: memref<1x128xf32, #tpu.memory_space<vmem>>, %arg5: memref<1152x128xbf16, #tpu.memory_space<vmem>>, %arg6: memref<1x128xf32, #tpu.memory_space<vmem>>, %arg7: memref<128x128xbf16, #tpu.memory_space<vmem>>, %arg8: memref<1x128xf32, #tpu.memory_space<vmem>>, %arg9: memref<1x4x8x128xbf16, #tpu.memory_space<vmem>>) attributes {dimension_semantics = [#tpu.dimension_semantics<parallel>, #tpu.dimension_semantics<parallel>], iteration_bounds = array<i64: 2, 2>, scalar_prefetch = 0 : i64, scratch_operands = 0 : i64, tpu.core_type = #tpu.core_type<tc>, window_params = [{transform_indices = @transform_0, window_bounds = array<i64: 1, 10, 10, 128>}, {pipeline_mode = #tpu.pipeline_mode<synchronous>, transform_indices = @transform_1, window_bounds = array<i64: 128, 128>}, {pipeline_mode = #tpu.pipeline_mode<synchronous>, transform_indices = @transform_2, window_bounds = array<i64: 1, 128>}, {pipeline_mode = #tpu.pipeline_mode<synchronous>, transform_indices = @transform_3, window_bounds = array<i64: 1152, 128>}, {pipeline_mode = #tpu.pipeline_mode<synchronous>, transform_indices = @transform_4, window_bounds = array<i64: 1, 128>}, {pipeline_mode = #tpu.pipeline_mode<synchronous>, transform_indices = @transform_5, window_bounds = array<i64: 128, 128>}, {pipeline_mode = #tpu.pipeline_mode<synchronous>, transform_indices = @transform_6, window_bounds = array<i64: 1, 128>}, {transform_indices = @transform_7, window_bounds = array<i64: 1, 4, 8, 128>}]} {
    %c4_i32 = arith.constant 4 : i32
    %0 = arith.muli %arg1, %c4_i32 : i32
    %c0 = arith.constant 0 : index
    %1 = arith.index_cast %0 : i32 to index
    %c0_0 = arith.constant 0 : index
    %c0_1 = arith.constant 0 : index
    %2 = vector.load %arg2[%c0, %1, %c0_0, %c0_1] : memref<1x10x10x128xbf16, #tpu.memory_space<vmem>>, vector<1x6x10x128xbf16>
    %3 = vector.shape_cast %2 : vector<1x6x10x128xbf16> to vector<6x10x128xbf16>
    %4 = vector.shape_cast %3 : vector<6x10x128xbf16> to vector<60x128xbf16>
    %c0_2 = arith.constant 0 : index
    %c0_3 = arith.constant 0 : index
    %5 = vector.load %arg3[%c0_2, %c0_3] : memref<128x128xbf16, #tpu.memory_space<vmem>>, vector<128x128xbf16>
    %cst = arith.constant dense<0.000000e+00> : vector<60x128xf32>
    %6 = tpu.matmul %4, %5, %cst {dimension_numbers = #tpu.dot_dimension_numbers<[1], [0], [0], [1], [0, 0, 1, 1], [], []>} : vector<60x128xbf16>, vector<128x128xbf16>, vector<60x128xf32> -> vector<60x128xf32>
    %c0_4 = arith.constant 0 : index
    %c0_5 = arith.constant 0 : index
    %7 = vector.load %arg4[%c0_4, %c0_5] : memref<1x128xf32, #tpu.memory_space<vmem>>, vector<1x128xf32>
    %8 = vector.broadcast %7 : vector<1x128xf32> to vector<60x128xf32>
    %9 = arith.addf %6, %8 : vector<60x128xf32>
    %cst_6 = arith.constant 0.000000e+00 : f32
    %10 = vector.broadcast %cst_6 : f32 to vector<60x128xf32>
    %11 = arith.maximumf %9, %10 : vector<60x128xf32>
    %12 = vector.shape_cast %11 : vector<60x128xf32> to vector<6x10x128xf32>
    %13 = tpu.iota {dimensions = array<i32: 0>} : vector<6x10x1xi32>
    %14 = vector.broadcast %0 : i32 to vector<6x10x1xi32>
    %15 = arith.addi %13, %14 : vector<6x10x1xi32>
    %16 = tpu.iota {dimensions = array<i32: 1>} : vector<6x10x1xi32>
    %c1_i32 = arith.constant 1 : i32
    %17 = vector.broadcast %c1_i32 : i32 to vector<6x10x1xi32>
    %18 = arith.cmpi sge, %15, %17 : vector<6x10x1xi32>
    %c8_i32 = arith.constant 8 : i32
    %19 = vector.broadcast %c8_i32 : i32 to vector<6x10x1xi32>
    %20 = arith.cmpi sle, %15, %19 : vector<6x10x1xi32>
    %21 = arith.andi %18, %20 : vector<6x10x1xi1>
    %c1_i32_7 = arith.constant 1 : i32
    %22 = vector.broadcast %c1_i32_7 : i32 to vector<6x10x1xi32>
    %23 = arith.cmpi sge, %16, %22 : vector<6x10x1xi32>
    %24 = arith.andi %21, %23 : vector<6x10x1xi1>
    %c8_i32_8 = arith.constant 8 : i32
    %25 = vector.broadcast %c8_i32_8 : i32 to vector<6x10x1xi32>
    %26 = arith.cmpi sle, %16, %25 : vector<6x10x1xi32>
    %27 = arith.andi %24, %26 : vector<6x10x1xi1>
    %cst_9 = arith.constant 0.000000e+00 : f32
    %28 = vector.shape_cast %27 : vector<6x10x1xi1> to vector<6x10x1xi1>
    %29 = vector.broadcast %28 : vector<6x10x1xi1> to vector<6x10x128xi1>
    %30 = vector.broadcast %cst_9 : f32 to vector<6x10x128xf32>
    %31 = arith.select %29, %12, %30 : vector<6x10x128xi1>, vector<6x10x128xf32>
    %32 = arith.truncf %31 : vector<6x10x128xf32> to vector<6x10x128xbf16>
    %33 = vector.extract_strided_slice %32 {offsets = [0, 0, 0], sizes = [6, 8, 128], strides = [1, 1, 1]} : vector<6x10x128xbf16> to vector<6x8x128xbf16>
    %34 = vector.extract_strided_slice %32 {offsets = [0, 1, 0], sizes = [6, 8, 128], strides = [1, 1, 1]} : vector<6x10x128xbf16> to vector<6x8x128xbf16>
    %35 = vector.extract_strided_slice %32 {offsets = [0, 2, 0], sizes = [6, 8, 128], strides = [1, 1, 1]} : vector<6x10x128xbf16> to vector<6x8x128xbf16>
    %36 = tpu.concatenate %33, %34, %35 in 2 : vector<6x8x128xbf16>, vector<6x8x128xbf16>, vector<6x8x128xbf16> -> vector<6x8x384xbf16>
    %37 = vector.extract_strided_slice %36 {offsets = [0, 0, 0], sizes = [4, 8, 384], strides = [1, 1, 1]} : vector<6x8x384xbf16> to vector<4x8x384xbf16>
    %38 = vector.extract_strided_slice %36 {offsets = [1, 0, 0], sizes = [4, 8, 384], strides = [1, 1, 1]} : vector<6x8x384xbf16> to vector<4x8x384xbf16>
    %39 = vector.extract_strided_slice %36 {offsets = [2, 0, 0], sizes = [4, 8, 384], strides = [1, 1, 1]} : vector<6x8x384xbf16> to vector<4x8x384xbf16>
    %40 = tpu.concatenate %37, %38, %39 in 2 : vector<4x8x384xbf16>, vector<4x8x384xbf16>, vector<4x8x384xbf16> -> vector<4x8x1152xbf16>
    %41 = vector.shape_cast %40 : vector<4x8x1152xbf16> to vector<32x1152xbf16>
    %c0_10 = arith.constant 0 : index
    %c0_11 = arith.constant 0 : index
    %42 = vector.load %arg5[%c0_10, %c0_11] : memref<1152x128xbf16, #tpu.memory_space<vmem>>, vector<1152x128xbf16>
    %cst_12 = arith.constant dense<0.000000e+00> : vector<32x128xf32>
    %43 = tpu.matmul %41, %42, %cst_12 {dimension_numbers = #tpu.dot_dimension_numbers<[1], [0], [0], [1], [0, 0, 1, 1], [], []>} : vector<32x1152xbf16>, vector<1152x128xbf16>, vector<32x128xf32> -> vector<32x128xf32>
    %c0_13 = arith.constant 0 : index
    %c0_14 = arith.constant 0 : index
    %44 = vector.load %arg6[%c0_13, %c0_14] : memref<1x128xf32, #tpu.memory_space<vmem>>, vector<1x128xf32>
    %45 = vector.broadcast %44 : vector<1x128xf32> to vector<32x128xf32>
    %46 = arith.addf %43, %45 : vector<32x128xf32>
    %cst_15 = arith.constant 0.000000e+00 : f32
    %47 = vector.broadcast %cst_15 : f32 to vector<32x128xf32>
    %48 = arith.maximumf %46, %47 : vector<32x128xf32>
    %49 = arith.truncf %48 : vector<32x128xf32> to vector<32x128xbf16>
    %c0_16 = arith.constant 0 : index
    %c0_17 = arith.constant 0 : index
    %50 = vector.load %arg7[%c0_16, %c0_17] : memref<128x128xbf16, #tpu.memory_space<vmem>>, vector<128x128xbf16>
    %cst_18 = arith.constant dense<0.000000e+00> : vector<32x128xf32>
    %51 = tpu.matmul %49, %50, %cst_18 {dimension_numbers = #tpu.dot_dimension_numbers<[1], [0], [0], [1], [0, 0, 1, 1], [], []>} : vector<32x128xbf16>, vector<128x128xbf16>, vector<32x128xf32> -> vector<32x128xf32>
    %52 = vector.extract_strided_slice %3 {offsets = [1, 1, 0], sizes = [4, 8, 128], strides = [1, 1, 1]} : vector<6x10x128xbf16> to vector<4x8x128xbf16>
    %53 = vector.shape_cast %52 : vector<4x8x128xbf16> to vector<32x128xbf16>
    %54 = arith.extf %53 : vector<32x128xbf16> to vector<32x128xf32>
    %c0_19 = arith.constant 0 : index
    %c0_20 = arith.constant 0 : index
    %55 = vector.load %arg8[%c0_19, %c0_20] : memref<1x128xf32, #tpu.memory_space<vmem>>, vector<1x128xf32>
    %56 = vector.broadcast %55 : vector<1x128xf32> to vector<32x128xf32>
    %57 = arith.addf %51, %56 : vector<32x128xf32>
    %58 = arith.addf %57, %54 : vector<32x128xf32>
    %cst_21 = arith.constant 0.000000e+00 : f32
    %59 = vector.broadcast %cst_21 : f32 to vector<32x128xf32>
    %60 = arith.maximumf %58, %59 : vector<32x128xf32>
    %61 = vector.shape_cast %60 : vector<32x128xf32> to vector<4x8x128xf32>
    %62 = arith.truncf %61 : vector<4x8x128xf32> to vector<4x8x128xbf16>
    %c0_22 = arith.constant 0 : index
    %c0_23 = arith.constant 0 : index
    %c0_24 = arith.constant 0 : index
    %c0_25 = arith.constant 0 : index
    %63 = vector.load %arg9[%c0_22, %c0_23, %c0_24, %c0_25] : memref<1x4x8x128xbf16, #tpu.memory_space<vmem>>, vector<1x4x8x128xbf16>
    %64 = vector.shape_cast %63 : vector<1x4x8x128xbf16> to vector<4x8x128xbf16>
    %65 = vector.shape_cast %62 : vector<4x8x128xbf16> to vector<1x4x8x128xbf16>
    tpu.vector_store %arg9[%c0_22, %c0_23, %c0_24, %c0_25], %65 {strides = array<i32>} : memref<1x4x8x128xbf16, #tpu.memory_space<vmem>>, vector<1x4x8x128xbf16>,
    return
  }
  func.func @transform_0(%arg0: i32, %arg1: i32) -> (i32, i32, i32, i32) {
    %c0_i32 = arith.constant 0 : i32
    %c0_i32_0 = arith.constant 0 : i32
    %c0_i32_1 = arith.constant 0 : i32
    %c0_i32_2 = arith.constant 0 : i32
    return %arg0, %c0_i32, %c0_i32_0, %c0_i32_1 : i32, i32, i32, i32
  }
  func.func @transform_1(%arg0: i32, %arg1: i32) -> (i32, i32) {
    %c0_i32 = arith.constant 0 : i32
    %c0_i32_0 = arith.constant 0 : i32
    %c0_i32_1 = arith.constant 0 : i32
    return %c0_i32, %c0_i32_0 : i32, i32
  }
  func.func @transform_2(%arg0: i32, %arg1: i32) -> (i32, i32) {
    %c0_i32 = arith.constant 0 : i32
    %c0_i32_0 = arith.constant 0 : i32
    %c0_i32_1 = arith.constant 0 : i32
    return %c0_i32, %c0_i32_0 : i32, i32
  }
  func.func @transform_3(%arg0: i32, %arg1: i32) -> (i32, i32) {
    %c0_i32 = arith.constant 0 : i32
    %c0_i32_0 = arith.constant 0 : i32
    %c0_i32_1 = arith.constant 0 : i32
    return %c0_i32, %c0_i32_0 : i32, i32
  }
  func.func @transform_4(%arg0: i32, %arg1: i32) -> (i32, i32) {
    %c0_i32 = arith.constant 0 : i32
    %c0_i32_0 = arith.constant 0 : i32
    %c0_i32_1 = arith.constant 0 : i32
    return %c0_i32, %c0_i32_0 : i32, i32
  }
  func.func @transform_5(%arg0: i32, %arg1: i32) -> (i32, i32) {
    %c0_i32 = arith.constant 0 : i32
    %c0_i32_0 = arith.constant 0 : i32
    %c0_i32_1 = arith.constant 0 : i32
    return %c0_i32, %c0_i32_0 : i32, i32
  }
  func.func @transform_6(%arg0: i32, %arg1: i32) -> (i32, i32) {
    %c0_i32 = arith.constant 0 : i32
    %c0_i32_0 = arith.constant 0 : i32
    %c0_i32_1 = arith.constant 0 : i32
    return %c0_i32, %c0_i32_0 : i32, i32
  }
  func.func @transform_7(%arg0: i32, %arg1: i32) -> (i32, i32, i32, i32) {
    %c0_i32 = arith.constant 0 : i32
    %c0_i32_0 = arith.constant 0 : i32
    %c0_i32_1 = arith.constant 0 : i32
    return %arg0, %arg1, %c0_i32, %c0_i32_0 : i32, i32, i32, i32
  }
}

</mosaic_0001>

<bundles_post_ra>
// kernel: bottleneck_pallas.1
= control target key start
LH: loop header
LB: loop body
LE: loop exit
PB: predicated region body
PF: predicated region fallthrough
CT: control target
= control target key end

     0   :  { %12 = vsyncpa [#allocation3], 0  ;;  %s3184_s24 = smov 0   ;;  %s3186_s25 = smov 0   ;;  %s3775_s0 = inlined_call_operand.vmem [shape: bf16[2,10,10,128], index: 0, kind: input, shape index: {}]   ;;  %s3776_s1 = inlined_call_operand.vmem [shape: bf16[128,128], index: 1, kind: input, shape index: {}]   ;;  %s3777_s2 = inlined_call_operand.vmem [shape: f32[1,128], index: 2, kind: input, shape index: {}]   ;;  %s3778_s3 = inlined_call_operand.hbm [shape: bf16[1152,128], index: 3, kind: input, shape index: {}]   ;;  %s3779_s4 = inlined_call_operand.vmem [shape: f32[1,128], index: 4, kind: input, shape index: {}]   ;;  %s3780_s5 = inlined_call_operand.vmem [shape: bf16[128,128], index: 5, kind: input, shape index: {}]   ;;  %s3781_s6 = inlined_call_operand.vmem [shape: f32[1,128], index: 6, kind: input, shape index: {}]   ;;  %s3782_s7 = inlined_call_operand.vmem [shape: bf16[2,8,8,128], index: 7, kind: output, shape index: {}]  }
   0x1   :  { %s3188_s26 = smov 0   ;;  %s3190_s27 = smov 0  }
   0x2   :  { %s3192_s28 = smov 0  }
   0x3 LB: > { %s2534_s29 = sadd.s32 4294967295, %s3137_s28   ;;  %s27_s30 = sadd.s32 1, %s3129_s26  ;;  %s3137_s28 = sphi %s3192_s28, %s18_s28   ;;  %s3133_s27 = sphi %s3190_s27, %s3830_s27   ;;  %s3129_s26 = sphi %s3188_s26, %s3829_s26   ;;  %s3125_s25 = sphi %s3186_s25, %s3828_s25   ;;  %s3121_s24 = sphi %s3184_s24, %s3827_s24  }
   0x4   : > { %p28_p0 = scmp.ge.s32.totalorder %s27_s30, 2  ;;  %s30_s8 = sadd.s32 1, %s3133_s27 }
   0x5   : > { %p2536_p1 = scmp.ge.s32.totalorder %s3137_s28, 1  ;;  %p215_p2 = scmp.lt.s32.totalorder %s3137_s28, 5 }
   0x6   : > { %s3832_s30 = smov (%p28_p0, %s27_s30), 0  ;;  %s3834_s8 = smov (!%p28_p0, %s30_s8), %s3133_s27 }
   0x7   : > { %p3217_p3 = pnand %p2536_p1, %p215_p2  ;;  %p32_p4 = scmp.ge.s32.totalorder %s3834_s8, 2 }
   0x8   : > { %p3221_p5 = scmp.eq.s32.totalorder %s2534_s29, 0  ;;  %s3139_s11 = smov [#allocation2]  }
   0x9   : > { %s3786_s9 = scalar_select %p3217_p3, 1, 0 }
   0xa   : > { %s3787_s10 = scalar_select %p3221_p5, 1, 0 }
   0xb   : > { %p2912_p6 = pneg %p3217_p3  ;;  %s3836_s8 = smov (%p32_p4, %s3834_s8), 0 }
   0xc   : > { %s233_s12 = sshll.u32 %s3139_s11, 4  ;;  %s3067_s16 = scalar_lea.hbm %s3778_s3, 9216  ;;  %s234_s12 = int_to_ptr.vmem [resolvable:$true] %s233_s12 }
   0xd   : > { %p3231_p7 = pnand %p3221_p5, %p2912_p6  ;;  %p3068_p8 = scmp.ne.s32.totalorder %s3778_s3, %s3067_s16 }
   0xe   : > { %p3074_p12 = scmp.lt.u32.totalorder %s3067_s16, %s3778_s3 }
   0xf   : > { %p3069_p9 = pneg %p3231_p7 }
  0x11   : > { %p3070_p10 = pnand %p3069_p9, %p3068_p8 }
  0x13   : > { %p3071_p11 = pneg %p3070_p10 }
  0x15   : > { %p3076_p13 = pnand %p3074_p12, %p3071_p11 }
  0x17   : > { %3079 = shalt.err (!%p3076_p13)
}
  0x18   : > { %s3080_s21 = scalar_lea.vmem %s234_s12, 9216  ;;  %p3088_p4 = scmp.lt.s32.totalorder %s234_s12, %s234_s12 }
  0x19   : > { %p3081_p0 = scmp.ne.s32.totalorder %s234_s12, %s3080_s21  ;;  %p3089_p6 = scmp.lt.s32.totalorder %s3080_s21, %s3080_s21 }
  0x1b   : > { %p3083_p1 = pnand %p3081_p0, %p3069_p9  ;;  %p3090_p5 = por %p3089_p6, %p3088_p4 }
  0x1d   : > { %p3084_p2 = pneg %p3083_p1 }
  0x1f   : > { %p3091_p3 = pnand %p3090_p5, %p3084_p2 }
  0x21   : > { %3094 = shalt.err (!%p3091_p3)
}
  0x22   : > { %s3140_s22 = smov 64   ;;  %s3141_s23 = smov 4  }
  0x23   : > { %2915 = dma.hbm_to_vmem [thread:$0]  (!%p3231_p7), %s3778_s3, 9216, %s234_s12, [#allocation3], %s3140_s22, %s3140_s22, %s3141_s23  }
  0x24   : > { %p3789_p8 = scmp.ne.s32.totalorder %s3786_s9, 0 }
  0x25   : > { %p3790_p10 = scmp.ne.s32.totalorder (!%p3789_p8), %s3787_s10, 0 }
  0x26   : > { %266 = sbr.rel (%p3789_p8) target bundleno = 840 (0x348), region = 48 }
  0x2d   : > { %3116 = dma.done.wait (%p3790_p10), [#allocation3], 9216  }
  0x2e   : > { %3118 = vsyncadd (%p3790_p10), [#allocation3], 4294958080  ;;  %p302_p3 = scmp.lt.s32.totalorder %s3125_s25, 1  ;;  %v3142_v0 = vmov 1966171168   ;;  %v357_v2 = vlaneseq  ;;  %v2963_v3 = vld [vmem:[%s3776_s1] sm:$0xff]  }
  0x2f   : > { %v355_v1 = vunpack.c.l.s4 %v3142_v0  ;;  %v2964_v4 = vld [vmem:[%s3776_s1 + $0x8] sm:$0xff]   ;;  %2843 = vmatprep.subr.bf16.mxu0 %v2963_v3  ;;  %s2664_s18 = sshll.u32 %s3121_s24, 5  ;;  %v2965_v7 = vld [vmem:[%s3776_s1 + $0x10] sm:$0xff]   ;;  %v2966_v9 = vld [vmem:[%s3776_s1 + $0x18] sm:$0xff]   ;;  %s3351_s16 = sshll.u32 %s3121_s24, 2 }
  0x30   : > { %s3838_s25 = smov (!%p302_p3, %s3125_s25), 1  ;;  %v3268_v6 = vshrl.u32 %v357_v2, 7  ;;  %2844 = vmatpush3.bf16.msra.mxu0 %v2963_v3  ;;  %v2967_v24 = vld [vmem:[%s3776_s1 + $0x20] sm:$0xff]   ;;  %v2968_v34 = vld [vmem:[%s3776_s1 + $0x28] sm:$0xff]   ;;  %v2969_v50 = vld [vmem:[%s3776_s1 + $0x30] sm:$0xff]   ;;  %p310_p5 = scmp.lt.s32.totalorder %s3351_s16, 7 }
  0x31   : > { %s2907_s12 = smul.u32 80, %s3838_s25  ;;  %v356_v5 = vunpack.c.0.s8 %v355_v1  ;;  %2845 = vmatprep.subr.bf16.mxu0 %v2964_v4  ;;  %v2974_v49 = vld [vmem:[#allocation2 + $0x40] sm:$0xff]   ;;  %v2970_v3 = vld [vmem:[%s3776_s1 + $0x38] sm:$0xff]   ;;  %s2543_s23 = sshll.u32 %s3838_s25, 3 }
  0x32   : > { %2711 = vmatprep.subr.bf16.mxu1 %v2974_v49  ;;  %v2977_v49 = vld [vmem:[#allocation2 + $0xd0] sm:$0xff]   ;;  %vm1071_vm5 = vcmp.ge.s32.totalorder %v3268_v6, 1 }
  0x33   : > { %s306_s17 = scalar_lea.vmem %s3775_s0, %s2907_s12  ;;  %v3280_v8 = vsub.s32 %v356_v5, %v3268_v6 }
  0x34   : > { %s3277_s21 = scalar_lea.vmem %s306_s17, %s2664_s18  ;;  %2846 = vmatpush3.bf16.msra.mxu0 %v2964_v4 }
  0x35   : > { %2847 = vmatprep.subr.bf16.mxu0 %v2965_v7  ;;  %v2548_v10 = vld.sshfl [vmem:[%s3277_s21] sm:$0x33 pattern:$0x75316420] }
  0x36   : > { %v3059_v11 = vld.sshfl [vmem:[%s3277_s21 + $0x8] sm:$0x33 pattern:$0x75316420]  ;;  %v353_v13 = vcombine.high %v2548_v10, %v2548_v10  ;;  %v360_v14 = vrot.slane %v2548_v10, %v3280_v8 }
  0x37   : > { %v2549_v12 = vld.sshfl [vmem:[%s3277_s21 + $0x4] sm:$0x1 pattern:$0x75316420]  ;;  %v391_v21 = vcombine.high %v3059_v11, %v3059_v11  ;;  %v398_v22 = vrot.slane %v3059_v11, %v3280_v8 }
  0x38   : > { %v3060_v15 = vld.sshfl [vmem:[%s3277_s21 + $0xc] sm:$0x1 pattern:$0x75316420]  ;;  %v383_v16 = vrot.slane %v2549_v12, %v3280_v8  ;;  %2848 = vmatpush3.bf16.msra.mxu0 %v2965_v7  ;;  %v367_v20 = vrot.slane %v353_v13, %v3280_v8 }
  0x39   : > { %v3061_v17 = vld.sshfl [vmem:[%s3277_s21 + $0x10] sm:$0x33 pattern:$0x75316420]  ;;  %2849 = vmatprep.subr.bf16.mxu0 %v2966_v9  ;;  %v421_v25 = vrot.slane %v3060_v15, %v3280_v8  ;;  %v405_v26 = vrot.slane %v391_v21, %v3280_v8  ;;  %v406_v27 = vcombine.high %v398_v22, %v398_v22 }
  0x3a   : > { %v3062_v18 = vld.sshfl [vmem:[%s3277_s21 + $0x14] sm:$0x1 pattern:$0x75316420]  ;;  %v597_v28 = vcombine.low %v360_v14, %v367_v20  ;;  %v2553_v29 = vcombine.high %v360_v14, %v367_v20  ;;  %v599_v30 = vcombine.low %v383_v16, %v398_v22  ;;  %v429_v31 = vcombine.high %v3061_v17, %v3061_v17 }
  0x3b   : > { %v3063_v19 = vld.sshfl [vmem:[%s3277_s21 + $0x18] sm:$0x33 pattern:$0x75316420]  ;;  %v436_v32 = vrot.slane %v3061_v17, %v3280_v8  ;;  %v459_v33 = vrot.slane %v3062_v18, %v3280_v8  ;;  %v407_v35 = vcombine.high %v405_v26, %v405_v26  ;;  %v600_v36 = vcombine.low %v405_v26, %v406_v27 }
  0x3c   : > { %v3064_v23 = vld.sshfl [vmem:[%s3277_s21 + $0x1c] sm:$0x1 pattern:$0x75316420]  ;;  %2850 = vmatpush3.bf16.msra.mxu0 %v2966_v9  ;;  %v607_v37 = vrot.slane %v597_v28, %v3280_v8  ;;  %v614_v38 = vrot.slane %v2553_v29, %v3280_v8  ;;  %v621_v39 = vrot.slane %v599_v30, %v3280_v8  ;;  %v443_v40 = vrot.slane %v429_v31, %v3280_v8 }
  0x3d   : > { %2851 = vmatprep.subr.bf16.mxu0 %v2967_v24  ;;  %v474_v41 = vrot.slane %v3063_v19, %v3280_v8  ;;  %v3065_v42 = vld.sshfl [vmem:[%s3277_s21 + $0x20] sm:$0x33 pattern:$0x75316420]  ;;  %v467_v43 = vcombine.high %v3063_v19, %v3063_v19  ;;  %v628_v44 = vrot.slane %v600_v36, %v3280_v8  ;;  %v646_v46 = vcombine.low %v407_v35, %v421_v25  ;;  %v2973_v36 = vld [vmem:[#allocation2 + $0xc8] sm:$0xff]  }
  0x3e   : > { %v629_v45 = vcombine.low %v607_v37, %v614_v38  ;;  %v497_v47 = vrot.slane %v3064_v23, %v3280_v8  ;;  %v2550_v48 = vld.sshfl [vmem:[%s3277_s21 + $0x28] sm:$0x33 pattern:$0x75316420]  ;;  %v647_v51 = vcombine.low %v436_v32, %v443_v40  ;;  %v2554_v52 = vcombine.high %v436_v32, %v443_v40  ;;  %v2971_v23 = vld [vmem:[#allocation2 + $0xc0] sm:$0xff]  }
  0x3f   : > { %v649_v53 = vcombine.low %v459_v33, %v474_v41  ;;  %v481_v54 = vrot.slane %v467_v43, %v3280_v8  ;;  %v3066_v55 = vld.sshfl [vmem:[%s3277_s21 + $0x24] sm:$0x1 pattern:$0x75316420]  ;;  %v630_v56 = vcombine.low %v621_v39, %v628_v44  ;;  %v656_v58 = vrot.slane %v646_v46, %v3280_v8  ;;  %v2975_v43 = vld [vmem:[#allocation2 + $0x88] sm:$0xff]  }
  0x40   : > { %2852 = vmatpush3.bf16.msra.mxu0 %v2967_v24  ;;  %v637_v57 = vrot.slane %v629_v45, %v3280_v8  ;;  %v482_v59 = vcombine.high %v474_v41, %v474_v41  ;;  %v663_v60 = vrot.slane %v647_v51, %v3280_v8  ;;  %v670_v61 = vrot.slane %v2554_v52, %v3280_v8  ;;  %v2551_v0 = vld.sshfl [vmem:[%s3277_s21 + $0x2c] sm:$0x1 pattern:$0x75316420]  ;;  %v2972_v33 = vld [vmem:[#allocation2 + $0x80] sm:$0xff]   ;;  %v2979_v51 = vld [vmem:[#allocation2 + $0x90] sm:$0xff]  }
  0x41   : > { %2853 = vmatprep.subr.bf16.mxu0 %v2968_v34  ;;  %v677_v62 = vrot.slane %v649_v53, %v3280_v8  ;;  %v483_v63 = vcombine.high %v481_v54, %v481_v54  ;;  %v644_v1 = vrot.slane %v630_v56, %v3280_v8  ;;  %v543_v9 = vcombine.high %v2550_v48, %v2550_v48  ;;  %v2980_v52 = vld [vmem:[#allocation2 + $0x8] sm:$0xff]   ;;  %v2981_v53 = vld [vmem:[#allocation2 + $0xd8] sm:$0xff]   ;;  %v2985_v56 = vld [vmem:[#allocation2 + $0xe0] sm:$0xff]  }
  0x42   : > { %v695_v2 = vcombine.low %v481_v54, %v482_v59  ;;  %v678_v4 = vcombine.low %v656_v58, %v663_v60  ;;  %v505_v11 = vcombine.high %v3065_v42, %v3065_v42  ;;  %v512_v12 = vrot.slane %v3065_v42, %v3280_v8  ;;  %v2982_v54 = vld [vmem:[#allocation2 + $0x50] sm:$0xff]   ;;  %v2987_v58 = vld [vmem:[#allocation2 + $0xa0] sm:$0xff]   ;;  %v2988_v59 = vld [vmem:[#allocation2 + $0x18] sm:$0xff]  }
  0x43   : > { %v679_v5 = vcombine.low %v670_v61, %v677_v62  ;;  %v696_v7 = vcombine.low %v483_v63, %v497_v47  ;;  %v645_v10 = vcombine.low %v637_v57, %v644_v1  ;;  %v535_v15 = vrot.slane %v3066_v55, %v3280_v8  ;;  %v2983_v55 = vld [vmem:[#allocation2 + $0x98] sm:$0xff]   ;;  %v2989_v60 = vld [vmem:[#allocation2 + $0xe8] sm:$0xff]   ;;  %v2990_v61 = vld [vmem:[#allocation2 + $0x60] sm:$0xff]  }
  0x44   : > { %2854 = vmatpush3.bf16.msra.mxu0 %v2968_v34  ;;  %v705_v13 = vrot.slane %v695_v2, %v3280_v8  ;;  %v519_v16 = vrot.slane %v505_v11, %v3280_v8  ;;  %v550_v17 = vrot.slane %v2550_v48, %v3280_v8  ;;  %v557_v18 = vrot.slane %v543_v9, %v3280_v8  ;;  %v2976_v48 = vld [vmem:[#allocation2] sm:$0xff]   ;;  %v2986_v57 = vld [vmem:[#allocation2 + $0x58] sm:$0xff]   ;;  %v2991_v62 = vld [vmem:[#allocation2 + $0xa8] sm:$0xff]  }
  0x45   : > { %2855 = vmatprep.subr.bf16.mxu0 %v2969_v50  ;;  %v712_v14 = vrot.slane %v696_v7, %v3280_v8  ;;  %2859 = vmatprep.mubr.bf16.mxu0 %v645_v10  ;;  %v573_v19 = vrot.slane %v2551_v0, %v3280_v8  ;;  %v686_v20 = vrot.slane %v678_v4, %v3280_v8  ;;  %v2992_v63 = vld [vmem:[#allocation2 + $0x20] sm:$0xff]   ;;  %v2993_v0 = vld [vmem:[#allocation2 + $0xf0] sm:$0xff]   ;;  %v2994_v1 = vld [vmem:[#allocation2 + $0x68] sm:$0xff]  }
  0x46   : > { %v693_v21 = vrot.slane %v679_v5, %v3280_v8  ;;  %v697_v24 = vcombine.low %v512_v12, %v519_v16  ;;  %v2555_v25 = vcombine.high %v512_v12, %v519_v16  ;;  %v558_v26 = vcombine.high %v550_v17, %v550_v17  ;;  %2712 = vmatpush3.bf16.msra.mxu1 %v2976_v48  ;;  %v2995_v2 = vld [vmem:[#allocation2 + $0xb0] sm:$0xff]   ;;  %v2997_v4 = vld [vmem:[#allocation2 + $0xf8] sm:$0xff]   ;;  %v3001_v10 = vld [vmem:[#allocation2 + $0x1c0] sm:$0xff]  }
  0x47   : > { %v727_v22 = vcombine.low %v705_v13, %v712_v14  ;;  %v559_v27 = vcombine.high %v557_v18, %v557_v18  ;;  %v744_v28 = vcombine.low %v535_v15, %v550_v17  ;;  %v2998_v5 = vld [vmem:[#allocation2 + $0x70] sm:$0xff]   ;;  %v2999_v7 = vld [vmem:[#allocation2 + $0xb8] sm:$0xff]   ;;  %v3006_v13 = vld [vmem:[#allocation2 + $0x140] sm:$0xff]   ;;  %v3143_v14 = vmov 1983009808  }
  0x48   : > { %2856 = vmatpush3.bf16.msra.mxu0 %v2969_v50  ;;  %v719_v29 = vrot.slane %v697_v24, %v3280_v8  ;;  %v726_v30 = vrot.slane %v2555_v25, %v3280_v8  ;;  %v745_v31 = vcombine.low %v557_v18, %v558_v26  ;;  %v694_v34 = vcombine.low %v686_v20, %v693_v21  ;;  %v2978_v50 = vld [vmem:[#allocation2 + $0x48] sm:$0xff]   ;;  %v3000_v9 = vld [vmem:[#allocation2 + $0x30] sm:$0xff]   ;;  %v3002_v11 = vld [vmem:[#allocation2 + $0x78] sm:$0xff]  }
  0x49   : > { %2857 = vmatprep.subr.bf16.mxu0 %v2970_v3  ;;  %v746_v32 = vcombine.low %v559_v27, %v573_v19  ;;  %v753_v35 = vrot.slane %v744_v28, %v3280_v8  ;;  %v735_v38 = vrot.slane %v727_v22, %v3280_v8  ;;  %2713 = vmatprep.subr.bf16.mxu1 %v2978_v50  ;;  %v3004_v12 = vld [vmem:[#allocation2 + $0x38] sm:$0xff]   ;;  %v919_v15 = vunpack.c.l.s4 %v3143_v14  ;;  %v3357_v18 = vld [vmem:[%s3777_s2] ss:$0 sm:$0xff] }
  0x4a   : > { %v728_v37 = vcombine.low %v719_v29, %v726_v30  ;;  %v760_v39 = vrot.slane %v745_v31, %v3280_v8  ;;  %2714 = vmatpush3.bf16.msra.mxu1 %v2980_v52  ;;  %v1044_v16 = vstv %s3351_s16  ;;  %v3360_v19 = vadd.s32 8, %v3268_v6  ;;  %s3840_s16 = smov (!%p310_p5, %s3351_s16), 7 }
  0x4b   : > { %v767_v40 = vrot.slane %v746_v32, %v3280_v8  ;;  %2715 = vmatprep.subr.bf16.mxu1 %v2982_v54  ;;  %v920_v17 = vunpack.c.0.s8 %v919_v15  ;;  %v1045_v20 = vadd.s32 1, %v1044_v16  ;;  %v3362_v22 = vadd.s32 2, %v1044_v16  ;;  %s313_s29 = sadd.s32 %s2543_s23, %s3840_s16 }
  0x4c   : > { %2858 = vmatpush3.bf16.msra.mxu0 %v2970_v3  ;;  %v742_v41 = vrot.slane %v728_v37, %v3280_v8  ;;  %v768_v42 = vcombine.low %v753_v35, %v760_v39  ;;  %v2996_v3 = vld [vmem:[#allocation2 + $0x28] sm:$0xff]   ;;  %vm1053_vm0 = vcmp.ge.s32.totalorder %v1044_v16, 1  ;;  %vm1059_vm1 = vcmp.le.s32.totalorder %v1044_v16, 8  ;;  %s2544_s11 = sshll.u32 %s313_s29, 2 }
  0x4d   : > { %2739 = vmatprep.subr.bf16.mxu0 %v2971_v23  ;;  %v782_v44 = vrot.slane %v767_v40, %v3280_v8  ;;  %v3366_v24 = vsub.s32 %v920_v17, %v3268_v6  ;;  %vm1086_vm2 = vcmp.le.s32.totalorder %v3360_v19, 8  ;;  %v3370_v28 = vadd.s32 5, %v1044_v16  ;;  %vm3389_vm10 = vmand %vm1053_vm0, %vm1059_vm1  ;;  %s315_s13 = scalar_lea.vmem %s3782_s7, %s2544_s11 }
  0x4e   : > { %v743_v45 = vcombine.low %v735_v38, %v742_v41  ;;  %v775_v46 = vrot.slane %v768_v42, %v3280_v8  ;;  %v2984_v8 = vld [vmem:[#allocation2 + $0x10] sm:$0xff]   ;;  %vm1054_vm3 = vcmp.ge.s32.totalorder %v1045_v20, 1  ;;  %vm1060_vm4 = vcmp.le.s32.totalorder %v1045_v20, 8  ;;  %vm3406_vm11 = vmand %vm3389_vm10, %vm1086_vm2 }
  0x4f   : > { %2860 = vmatmul.mubr.bf16.vlgmr.msra.gmra.mrb[0].mxu0 %v694_v34  ;;  %2716 = vmatpush3.bf16.msra.mxu1 %v2984_v8  ;;  %vm1055_vm6 = vcmp.ge.s32.totalorder %v3362_v22, 1  ;;  %vm1061_vm7 = vcmp.le.s32.totalorder %v3362_v22, 8  ;;  %v3378_v37 = vadd.s32 3, %v1044_v16  ;;  %vm1058_vm8 = vcmp.ge.s32.totalorder %v3370_v28, 1  ;;  %vm3417_vm14 = vmand %vm1054_vm3, %vm1060_vm4 }
  0x50   : > { %2740 = vmatpush3.bf16.msra.mxu0 %v2972_v33  ;;  %2863 = vmatprep.mubr.bf16.mxu0 %v743_v45  ;;  %v783_v47 = vcombine.low %v775_v46, %v782_v44  ;;  %vm1064_vm9 = vcmp.le.s32.totalorder %v3370_v28, 8  ;;  %v3383_v41 = vadd.s32 4, %v1044_v16  ;;  %vm3433_vm1 = vmand %vm1055_vm6, %vm1061_vm7  ;;  %v3037_v28 = vld [vmem:[#allocation2 + $0x210] sm:$0xff]  }
  0x51   : > { %2741 = vmatprep.subr.bf16.mxu0 %v2973_v36  ;;  %2717 = vmatprep.subr.bf16.mxu1 %v2986_v57  ;;  %vm1056_vm12 = vcmp.ge.s32.totalorder %v3378_v37, 1  ;;  %vm1062_vm13 = vcmp.le.s32.totalorder %v3378_v37, 8  ;;  %vm3444_vm3 = vmand %vm3417_vm14, %vm1086_vm2 }
  0x52   : > { %vm1057_vm15 = vcmp.ge.s32.totalorder %v3383_v41, 1  ;;  %vm1063_vm0 = vcmp.le.s32.totalorder %v3383_v41, 8  ;;  %vm3454_vm4 = vmand %vm3389_vm10, %vm1071_vm5  ;;  %v3038_v41 = vld [vmem:[#allocation2 + $0x218] sm:$0xff]  }
  0x53   : > { %2718 = vmatpush3.bf16.msra.mxu1 %v2988_v59  ;;  %vm3469_vm6 = vmand %vm3433_vm1, %vm1086_vm2 }
  0x54   : > { %2742 = vmatpush3.bf16.msra.mxu0 %v2975_v43  ;;  %2719 = vmatprep.subr.bf16.mxu1 %v2990_v61  ;;  %vm3480_vm7 = vmand %vm1058_vm8, %vm1064_vm9 }
  0x55   : > { %2743 = vmatprep.subr.bf16.mxu0 %v2977_v49  ;;  %vm3497_vm8 = vmand %vm3433_vm1, %vm1071_vm5 }
  0x56   : > { %vm3512_vm9 = vmand %vm3417_vm14, %vm1071_vm5 }
  0x57   : > { %2864 = vmatmul.mubr.bf16.gmra.mrb[4].mxu0 %v783_v47  ;;  %2720 = vmatpush3.bf16.msra.mxu1 %v2992_v63  ;;  %vm3522_vm10 = vmand %vm3480_vm7, %vm1071_vm5 }
  0x58   : > { %2744 = vmatpush3.bf16.msra.mxu0 %v2979_v51  ;;  %2721 = vmatprep.subr.bf16.mxu1 %v2994_v1  ;;  %vm3540_vm14 = vmand %vm3480_vm7, %vm1086_vm2  ;;  %vm2249_vm7 = vsmask.f32 3328 }
  0x59   : > { %2745 = vmatprep.subr.bf16.mxu0 %v2981_v53  ;;  %vm2676_vm1 = vmpackc.low %vm3497_vm8, %vm3512_vm9 }
  0x5b   : > { %2722 = vmatpush3.bf16.msra.mxu1 %v2996_v3 }
  0x5c   : > { %2746 = vmatpush3.bf16.msra.mxu0 %v2983_v55  ;;  %2723 = vmatprep.subr.bf16.mxu1 %v2998_v5 }
  0x5d   : > { %2747 = vmatprep.subr.bf16.mxu0 %v2985_v56 }
  0x5f   : > { %2724 = vmatpush3.bf16.msra.mxu1 %v3000_v9 }
  0x60   : > { %2748 = vmatpush3.bf16.msra.mxu0 %v2987_v58  ;;  %2725 = vmatprep.subr.bf16.mxu1 %v3002_v11 }
  0x61   : > { %2749 = vmatprep.subr.bf16.mxu0 %v2989_v60 }
  0x63   : > { %2726 = vmatpush3.bf16.msra.mxu1 %v3004_v12 }
  0x64   : > { %2750 = vmatpush3.bf16.msra.mxu0 %v2991_v62  ;;  %2767 = vmatprep.subr.bf16.mxu1 %v3006_v13 }
  0x65   : > { %2751 = vmatprep.subr.bf16.mxu0 %v2993_v0 }
  0x68   : > { %2752 = vmatpush3.bf16.msra.mxu0 %v2995_v2 }
  0x69   : > { %2753 = vmatprep.subr.bf16.mxu0 %v2997_v4 }
  0x6c   : > { %2754 = vmatpush3.bf16.msra.mxu0 %v2999_v7 }
  0x6d   : > { %2795 = vmatprep.subr.bf16.mxu0 %v3001_v10 }
 0x122   : > { %v2861_v21 = vpop.f32.mrb[0].mxu0 }
 0x123   : > { %v879_v23 = vadd.f32 %v2861_v21, %v3357_v18  ;;  %v870_v25 = vpop.f32.mrb[1].mxu0 }
 0x124   : > { %v871_v26 = vadd.f32 %v3357_v18, %v870_v25  ;;  %v2862_v27 = vpop.f32.mrb[2].mxu0 }
 0x125   : > { %v903_v29 = vmax.f32 %v879_v23, 0.0  ;;  %v882_v30 = vadd.f32 %v2862_v27, %v3357_v18  ;;  %v873_v31 = vpop.f32.mrb[3].mxu0  ;;  %v3017_v23 = vld [vmem:[#allocation2 + $0x1e0] sm:$0xff]  }
 0x126   : > { %v901_v32 = vmax.f32 %v871_v26, 0.0  ;;  %v874_v33 = vadd.f32 %v3357_v18, %v873_v31 }
 0x127   : > { %v951_v34 = vcombine.high %v903_v29, %v903_v29  ;;  %v958_v35 = vrot.slane %v903_v29, %v3366_v24  ;;  %v904_v36 = vmax.f32 %v882_v30, 0.0 }
 0x128   : > { %v917_v38 = vcombine.high %v901_v32, %v901_v32  ;;  %v924_v39 = vrot.slane %v901_v32, %v3366_v24  ;;  %v902_v40 = vmax.f32 %v874_v33, 0.0 }
 0x129   : > { %v965_v42 = vrot.slane %v951_v34, %v3366_v24  ;;  %v966_v43 = vcombine.high %v958_v35, %v958_v35  ;;  %v968_v44 = vcombine.high %v904_v36, %v904_v36  ;;  %v975_v45 = vrot.slane %v904_v36, %v3366_v24 }
 0x12a   : > { %v931_v47 = vrot.slane %v917_v38, %v3366_v24  ;;  %v932_v48 = vcombine.high %v924_v39, %v924_v39  ;;  %v934_v49 = vcombine.high %v902_v40, %v902_v40  ;;  %v941_v50 = vrot.slane %v902_v40, %v3366_v24  ;;  %v2865_v51 = vpop.f32.mrb[4].mxu0 }
 0x12b   : > { %v967_v52 = vcombine.high %v965_v42, %v965_v42  ;;  %v3396_v53 = vrot.slane %v966_v43, %v3366_v24  ;;  %v3399_v54 = vrot.slane %v968_v44, %v3366_v24  ;;  %v983_v55 = vcombine.high %v975_v45, %v975_v45  ;;  %v886_v8 = vpop.f32.mrb[5].mxu0 }
 0x12c   : > { %v933_v56 = vcombine.high %v931_v47, %v931_v47  ;;  %v1123_v57 = vcombine.low %v924_v39, %v932_v48  ;;  %v948_v58 = vrot.slane %v934_v49, %v3366_v24  ;;  %v949_v59 = vcombine.high %v941_v50, %v941_v50  ;;  %v2866_v61 = vpop.f32.mrb[6].mxu0  ;;  %v3014_v48 = vld [vmem:[#allocation2 + $0x150] sm:$0xff]  }
 0x12d   : > { %v1171_v62 = vcombine.low %v965_v42, %v967_v52  ;;  %v1172_v63 = vcombine.low %v975_v45, %v983_v55  ;;  %v1194_v0 = vrot.slane %v3399_v54, %v3366_v24  ;;  %v1146_v1 = vrot.slane %v941_v50, %v3366_v24  ;;  %v889_v2 = vpop.f32.mrb[7].mxu0 }
 0x12e   : > { %v1124_v4 = vcombine.low %v931_v47, %v933_v56  ;;  %v1131_v5 = vrot.slane %v1123_v57, %v3366_v24  ;;  %v950_v7 = vcombine.high %v948_v58, %v948_v58  ;;  %v1147_v9 = vcombine.low %v949_v59, %v948_v58 }
 0x12f   : > { %v1179_v10 = vrot.slane %v1171_v62, %v3366_v24  ;;  %v1186_v11 = vrot.slane %v1172_v63, %v3366_v24  ;;  %v1280_v12 = vsel %vm3406_vm11, %v1146_v1, 0.0  ;;  %v895_v13 = vadd.f32 %v2865_v51, %v3357_v18  ;;  %vm3531_vm11 = vmand %vm1056_vm12, %vm1062_vm13 }
 0x130   : > { %v1138_v15 = vrot.slane %v1124_v4, %v3366_v24  ;;  %v1148_v16 = vcombine.low %v950_v7, %v958_v35  ;;  %v1155_v17 = vrot.slane %v1147_v9, %v3366_v24  ;;  %v887_v20 = vadd.f32 %v3357_v18, %v886_v8  ;;  %vm3550_vm12 = vmand %vm1057_vm15, %vm1063_vm0 }
 0x131   : > { %v3448_v22 = vcombine.low %v1179_v10, %v1186_v11  ;;  %v907_v25 = vmax.f32 %v895_v13, 0.0  ;;  %v984_v26 = vcombine.high %v3399_v54, %v3399_v54  ;;  %v898_v27 = vadd.f32 %v2866_v61, %v3357_v18  ;;  %vm3564_vm13 = vmand %vm3531_vm11, %vm1071_vm5 }
 0x132   : > { %v3461_v29 = vcombine.low %v1131_v5, %v1138_v15  ;;  %v1162_v30 = vrot.slane %v1148_v16, %v3366_v24  ;;  %v905_v31 = vmax.f32 %v887_v20, 0.0  ;;  %v890_v32 = vadd.f32 %v3357_v18, %v889_v2  ;;  %vm3577_vm15 = vmand %vm3531_vm11, %vm1086_vm2 }
 0x133   : > { %v1019_v34 = vcombine.high %v907_v25, %v907_v25  ;;  %v3474_v35 = vrot.slane %v907_v25, %v3366_v24  ;;  %v908_v36 = vmax.f32 %v898_v27, 0.0  ;;  %v1282_v18 = vsel %vm3444_vm3, %v3396_v53, 0.0  ;;  %vm1096_vm0 = vmand %vm3550_vm12, %vm1086_vm2  ;;  %v3039_v53 = vld [vmem:[#allocation2 + $0x220] sm:$0xff]  }
 0x134   : > { %v3487_v39 = vcombine.low %v1155_v17, %v1162_v30  ;;  %v1279_v40 = vsel %vm3454_vm4, %v3461_v29, 0.0  ;;  %v985_v42 = vcombine.high %v905_v31, %v905_v31  ;;  %v992_v43 = vrot.slane %v905_v31, %v3366_v24  ;;  %vm3618_vm2 = vmand %vm3550_vm12, %vm1071_vm5 }
 0x135   : > { %v3501_v44 = vpack.c.bf16 %v1280_v12, %v1279_v40  ;;  %v1033_v45 = vrot.slane %v1019_v34, %v3366_v24  ;;  %v1034_v46 = vcombine.high %v3474_v35, %v3474_v35  ;;  %v1242_v47 = vrot.slane %v3474_v35, %v3366_v24  ;;  %v3003_v35 = vld [vmem:[#allocation2 + $0x180] sm:$0xff]   ;;  %vm2679_vm5 = vmpackc.low %vm3618_vm2, %vm3564_vm13 }
 0x136   : > { %v999_v49 = vrot.slane %v985_v42, %v3366_v24  ;;  %v1000_v50 = vcombine.high %v992_v43, %v992_v43  ;;  %v1195_v51 = vcombine.low %v984_v26, %v992_v43  ;;  %v1042_v52 = vrot.slane %v908_v36, %v3366_v24  ;;  %v3005_v42 = vld [vmem:[#allocation2 + $0x1c8] sm:$0xff]   ;;  %vm2670_vm3 = vmpackc.low %vm3512_vm9, %vm3454_vm4 }
 0x137   : > { %v1345_v55 = vrot.slane %v3501_v44, 1  ;;  %v1243_v8 = vcombine.low %v1034_v46, %v1033_v45  ;;  %v1035_v56 = vcombine.high %v1033_v45, %v1033_v45  ;;  %v906_v57 = vmax.f32 %v890_v32, 0.0  ;;  %vm2673_vm4 = vmpackc.low %vm3564_vm13, %vm3497_vm8  ;;  %v3040_v46 = vld [vmem:[#allocation2 + $0x228] sm:$0xff]  }
 0x138   : > { %v1001_v59 = vcombine.high %v999_v49, %v999_v49  ;;  %v1196_v60 = vcombine.low %v1000_v50, %v999_v49  ;;  %v1203_v61 = vrot.slane %v1195_v51, %v3366_v24  ;;  %v1043_v62 = vcombine.high %v1042_v52, %v1042_v52 }
 0x139   : > { %v1251_v1 = vrot.slane %v1243_v8, %v3366_v24  ;;  %v1244_v37 = vcombine.low %v1035_v56, %v1042_v52  ;;  %v1002_v2 = vcombine.high %v906_v57, %v906_v57  ;;  %v1009_v3 = vrot.slane %v906_v57, %v3366_v24  ;;  %v3007_v57 = vld [vmem:[#allocation2 + $0x188] sm:$0xff]  }
 0x13a   : > { %v1210_v5 = vrot.slane %v1196_v60, %v3366_v24  ;;  %v1218_v7 = vrot.slane %v1001_v59, %v3366_v24  ;;  %v1266_v9 = vrot.slane %v1043_v62, %v3366_v24  ;;  %v1281_v10 = vsel %vm3512_vm9, %v3487_v39, 0.0  ;;  %v3009_v59 = vld [vmem:[#allocation2 + $0x1d0] sm:$0xff]  }
 0x13b   : > { %v1258_v11 = vrot.slane %v1244_v37, %v3366_v24  ;;  %v1016_v12 = vrot.slane %v1002_v2, %v3366_v24  ;;  %v1017_v13 = vcombine.high %v1009_v3, %v1009_v3  ;;  %v1283_v14 = vsel %vm3497_vm8, %v3448_v22, 0.0 }
 0x13c   : > { %v1211_v16 = vcombine.low %v1203_v61, %v1210_v5  ;;  %v1290_v17 = vsel %vm3540_vm14, %v1266_v9, 0.0  ;;  %v1284_v20 = vsel %vm3469_vm6, %v1194_v0, 0.0  ;;  %v1292_v21 = vpack.c.bf16 %v1282_v18, %v1281_v10  ;;  %vm2685_vm6 = vmpackc.low %vm3522_vm10, %vm3618_vm2 }
 0x13d   : > { %v3592_v25 = vcombine.low %v1251_v1, %v1258_v11  ;;  %v1018_v26 = vcombine.high %v1016_v12, %v1016_v12  ;;  %v1219_v27 = vcombine.low %v1009_v3, %v1017_v13  ;;  %v1293_v30 = vpack.c.bf16 %v1284_v20, %v1283_v14  ;;  %v3010_v14 = vld [vmem:[#allocation2 + $0x148] sm:$0xff]  }
 0x13e   : > { %v1346_v54 = vrot.slane %v1292_v21, 1  ;;  %v2677_v0 = vpack.c.bf16 %v3448_v22, %v3487_v39  ;;  %v1285_v19 = vsel %vm3564_vm13, %v1211_v16, 0.0  ;;  %v1286_v31 = vsel %vm3577_vm15, %v1218_v7, 0.0  ;;  %v3011_v7 = vld [vmem:[#allocation2 + $0x190] sm:$0xff]  }
 0x13f   : > { %v1289_v32 = vsel %vm3522_vm10, %v3592_v25, 0.0  ;;  %v1220_v33 = vcombine.low %v1016_v12, %v1018_v26  ;;  %v1227_v34 = vrot.slane %v1219_v27, %v3366_v24  ;;  %v1288_v36 = vsel %vm1096_vm0, %v1242_v47, 0.0 }
 0x140   : > { %v3608_v38 = vpack.c.bf16 %v1290_v17, %v1289_v32  ;;  %2678 = vmatprep.mubr.msk.bf16.mxu0 %vm2676_vm1, %v2677_v0  ;;  %v2567_v18 = vcombine.low %v1345_v55, %v1346_v54  ;;  %v3610_v40 = vpack.c.bf16 %v1286_v31, %v1285_v19  ;;  %v1298_v43 = vshrl.u32 %v3501_v44, 16  ;;  %v3013_v17 = vld [vmem:[#allocation2 + $0x1d8] sm:$0xff]   ;;  %v3012_v0 = vld [vmem:[#allocation2 + $0x108] sm:$0xff]  }
 0x141   : > { %v1234_v45 = vrot.slane %v1220_v33, %v3366_v24  ;;  %v1300_v47 = vshll.u32 %v3501_v44, 16  ;;  %v1305_v49 = vshrl.u32 %v1292_v21, 16  ;;  %v1307_v50 = vshll.u32 %v1292_v21, 16  ;;  %v3015_v19 = vld [vmem:[#allocation2 + $0x198] sm:$0xff]  }
 0x142   : > { %2064 = vmatmul.mubr.bf16.vlgmr.msra.gmra.mrb[8].mxu0 %v2567_v18  ;;  %v1312_v51 = vshrl.u32 %v1293_v30, 16  ;;  %v1314_v52 = vshll.u32 %v1293_v30, 16  ;;  %v2671_v55 = vpack.c.bf16 %v3487_v39, %v3461_v29  ;;  %v1319_v24 = vshrl.u32 %v3610_v40, 16  ;;  %v3018_v18 = vld [vmem:[#allocation2 + $0x158] sm:$0xff]  }
 0x143   : > { %v3626_v8 = vcombine.low %v1227_v34, %v1234_v45  ;;  %2796 = vmatpush3.bf16.msra.mxu0 %v3003_v35  ;;  %v1302_v6 = vrot.slane %v1300_v47, 1  ;;  %v1309_v56 = vrot.slane %v1307_v50, 1  ;;  %v1321_v58 = vshll.u32 %v3610_v40, 16  ;;  %v3022_v45 = vld [vmem:[#allocation2 + $0x160] sm:$0xff]   ;;  %v3023_v47 = vld [vmem:[#allocation2 + $0x1a8] sm:$0xff]  }
 0x144   : > { %2797 = vmatprep.subr.bf16.mxu0 %v3005_v42  ;;  %v1316_v44 = vrot.slane %v1314_v52, 1  ;;  %v1347_v60 = vrot.slane %v1293_v30, 1  ;;  %v1348_v29 = vrot.slane %v3610_v40, 1  ;;  %v3635_v39 = vpack.c.bf16 %v1211_v16, %v3448_v22  ;;  %v3008_v22 = vld [vmem:[#allocation2 + $0x100] sm:$0xff]   ;;  %v3021_v42 = vld [vmem:[#allocation2 + $0x1e8] sm:$0xff]   ;;  %v3027_v52 = vld [vmem:[#allocation2 + $0x1b0] sm:$0xff]  }
 0x145   : > { %v1287_v61 = vsel %vm3618_vm2, %v3626_v8, 0.0  ;;  %v2680_v62 = vpack.c.bf16 %v3626_v8, %v1211_v16  ;;  %v1303_v63 = vor.u32 %v1302_v6, %v1298_v43  ;;  %v3641_v1 = vor.u32 %v1309_v56, %v1305_v49  ;;  %v3019_v40 = vld [vmem:[#allocation2 + $0x1a0] sm:$0xff]   ;;  %v3020_v43 = vld [vmem:[#allocation2 + $0x118] sm:$0xff]   ;;  %v3025_v49 = vld [vmem:[#allocation2 + $0x1f0] sm:$0xff]  }
 0x146   : > { %v1295_v37 = vpack.c.bf16 %v1288_v36, %v1287_v61  ;;  %v3643_v2 = vor.u32 %v1316_v44, %v1312_v51  ;;  %v1323_v3 = vrot.slane %v1321_v58, 1  ;;  %v3645_v4 = vcombine.low %v1347_v60, %v1348_v29  ;;  %v3024_v50 = vld [vmem:[#allocation2 + $0x120] sm:$0xff]   ;;  %v3026_v51 = vld [vmem:[#allocation2 + $0x168] sm:$0xff]   ;;  %v3030_v6 = vld [vmem:[#allocation2 + $0x170] sm:$0xff]  }
 0x147   : > { %2681 = vmatprep.mubr.msk.bf16.mxu0 %vm2679_vm5, %v2680_v62  ;;  %v2566_v5 = vcombine.low %v1303_v63, %v3641_v1  ;;  %2798 = vmatpush3.bf16.msra.mxu0 %v3007_v57  ;;  %v2570_v9 = vcombine.low %v1346_v54, %v1347_v60  ;;  %v1333_v10 = vshrl.u32 %v3608_v38, 16  ;;  %v1335_v11 = vshll.u32 %v3608_v38, 16  ;;  %v3031_v56 = vld [vmem:[#allocation2 + $0x1b8] sm:$0xff]   ;;  %v3032_v57 = vld [vmem:[#allocation2 + $0x130] sm:$0xff]   ;;  %v3036_v60 = vld [vmem:[#allocation2 + $0x208] sm:$0xff]  }
 0x148   : > { %v2569_v12 = vcombine.low %v3641_v1, %v3643_v2  ;;  %2799 = vmatprep.subr.bf16.mxu0 %v3009_v59  ;;  %v3656_v13 = vor.u32 %v1323_v3, %v1319_v24  ;;  %v1326_v15 = vshrl.u32 %v1295_v37, 16  ;;  %v1328_v16 = vshll.u32 %v1295_v37, 16  ;;  %v3028_v24 = vld [vmem:[#allocation2 + $0x128] sm:$0xff]   ;;  %v3033_v58 = vld [vmem:[#allocation2 + $0x178] sm:$0xff]   ;;  %v3035_v59 = vld [vmem:[#allocation2 + $0x200] sm:$0xff]  }
 0x149   : > { %2014 = vmatprep.mubr.bf16.mxu1 %v2566_v5  ;;  %v1337_v20 = vrot.slane %v1335_v11, 1  ;;  %v1349_v21 = vrot.slane %v1295_v37, 1  ;;  %v1350_v26 = vrot.slane %v3608_v38, 1  ;;  %v2686_v27 = vpack.c.bf16 %v3592_v25, %v3626_v8  ;;  %v3016_v38 = vld [vmem:[#allocation2 + $0x110] sm:$0xff]   ;;  %v3034_v44 = vld [vmem:[#allocation2 + $0x138] sm:$0xff]   ;;  %v3043_v8 = vld [vmem:[%s3780_s5] sm:$0xff]  }
 0x14a   : > { %2672 = vmatmul.mubr.msk.bf16.vlgmr.msra.gmra.mrb[0].mxu1 %vm2670_vm3, %v2671_v55  ;;  %v2572_v30 = vcombine.low %v3643_v2, %v3656_v13  ;;  %2072 = vmatmul.mubr.bf16.gmra.mrb[12].mxu0 %v3645_v4  ;;  %v1330_v54 = vrot.slane %v1328_v16, 1  ;;  %v3029_v55 = vld [vmem:[#allocation2 + $0x1f8] sm:$0xff]   ;;  %v3045_v61 = vld [vmem:[%s3780_s5 + $0x10] sm:$0xff]   ;;  %v3047_v63 = vld [vmem:[%s3780_s5 + $0x20] sm:$0xff]   ;;  %vm2250_vm8 = vsmask.f32 7440 }
 0x14b   : > { %2768 = vmatpush3.bf16.msra.mxu1 %v3008_v22  ;;  %2800 = vmatpush3.bf16.msra.mxu0 %v3011_v7  ;;  %v1338_v31 = vor.u32 %v1337_v20, %v1333_v10  ;;  %v2576_v32 = vcombine.low %v1348_v29, %v1349_v21  ;;  %v3669_v33 = vcombine.low %v1349_v21, %v1350_v26  ;;  %v3041_v29 = vld [vmem:[#allocation2 + $0x230] sm:$0xff]   ;;  %v3042_v25 = vld [vmem:[#allocation2 + $0x238] sm:$0xff]   ;;  %v3048_v1 = vld [vmem:[%s3780_s5 + $0x28] sm:$0xff]  }
 0x14c   : > { %2022 = vmatprep.mubr.bf16.mxu1 %v2572_v30  ;;  %2769 = vmatprep.subr.bf16.mxu1 %v3010_v14  ;;  %v3671_v34 = vor.u32 %v1330_v54, %v1326_v15  ;;  %v3046_v62 = vld [vmem:[%s3780_s5 + $0x18] sm:$0xff]   ;;  %v3049_v37 = vld [vmem:[%s3780_s5 + $0x30] sm:$0xff]   ;;  %vm3739_vm9 = vmor %vm2249_vm7, %vm2250_vm8 }
 0x14d   : > { %2161 = vmatprep.mubr.bf16.mxu0 %v2572_v30  ;;  %2801 = vmatprep.subr.bf16.mxu0 %v3013_v17  ;;  %v3050_v2 = vld [vmem:[%s3780_s5 + $0x38] sm:$0xff]  }
 0x14e   : > { %v2578_v35 = vcombine.low %v3671_v34, %v1338_v31  ;;  %v2575_v36 = vcombine.low %v3656_v13, %v3671_v34 }
 0x14f   : > { %2770 = vmatpush3.bf16.msra.mxu1 %v3012_v0  ;;  %2802 = vmatpush3.bf16.msra.mxu0 %v3015_v19 }
 0x150   : > { %2771 = vmatprep.subr.bf16.mxu1 %v3014_v48  ;;  %2803 = vmatprep.subr.bf16.mxu0 %v3017_v23 }
 0x152   : > { %2675 = vmatmul.mubr.msk.bf16.gmra.mrb[4].mxu1 %vm2673_vm4, %v3635_v39 }
 0x153   : > { %2772 = vmatpush3.bf16.msra.mxu1 %v3016_v38  ;;  %2112 = vmatprep.mubr.bf16.mxu1 %v2570_v9 }
 0x154   : > { %2773 = vmatprep.subr.bf16.mxu1 %v3018_v18  ;;  %2804 = vmatpush3.bf16.msra.mxu0 %v3019_v40 }
 0x155   : > { %2805 = vmatprep.subr.bf16.mxu0 %v3021_v42 }
 0x157   : > { %2774 = vmatpush3.bf16.msra.mxu1 %v3020_v43 }
 0x158   : > { %2775 = vmatprep.subr.bf16.mxu1 %v3022_v45  ;;  %2806 = vmatpush3.bf16.msra.mxu0 %v3023_v47 }
 0x159   : > { %2807 = vmatprep.subr.bf16.mxu0 %v3025_v49 }
 0x15b   : > { %2776 = vmatpush3.bf16.msra.mxu1 %v3024_v50 }
 0x15c   : > { %2777 = vmatprep.subr.bf16.mxu1 %v3026_v51  ;;  %2808 = vmatpush3.bf16.msra.mxu0 %v3027_v52 }
 0x15d   : > { %2809 = vmatprep.subr.bf16.mxu0 %v3029_v55 }
 0x15f   : > { %2778 = vmatpush3.bf16.msra.mxu1 %v3028_v24 }
 0x160   : > { %2779 = vmatprep.subr.bf16.mxu1 %v3030_v6  ;;  %2810 = vmatpush3.bf16.msra.mxu0 %v3031_v56 }
 0x161   : > { %2887 = vmatprep.subr.bf16.mxu0 %v3043_v8 }
 0x163   : > { %2780 = vmatpush3.bf16.msra.mxu1 %v3032_v57  ;;  %2684 = vmatmul.mubr.msk.bf16.vlgmr.msra.gmra.mrb[16].mxu0 %vm2673_vm4, %v3635_v39  ;;  %v3044_v39 = vld [vmem:[%s3780_s5 + $0x8] sm:$0xff]  }
 0x164   : > { %2781 = vmatprep.subr.bf16.mxu1 %v3033_v58  ;;  %2169 = vmatprep.mubr.bf16.mxu0 %v2578_v35 }
 0x165   : > { %2888 = vmatpush3.bf16.msra.mxu0 %v3043_v8 }
 0x166   : > { %2889 = vmatprep.subr.bf16.mxu0 %v3044_v39 }
 0x167   : > { %2782 = vmatpush3.bf16.msra.mxu1 %v3034_v44 }
 0x168   : > { %2867 = vmatprep.subr.bf16.mxu1 %v3035_v59 }
 0x169   : > { %2890 = vmatpush3.bf16.msra.mxu0 %v3044_v39 }
 0x16a   : > { %2113 = vmatmul.mubr.bf16.vlgmr.msra.gmra.mrb[8].mxu1 %v2569_v12  ;;  %2891 = vmatprep.subr.bf16.mxu0 %v3045_v61  ;;  %v2564_v12 = vld [vmem:[%s3779_s4] ss:$0 sm:$0xff] }
 0x16b   : > { %2120 = vmatprep.mubr.bf16.mxu1 %v2576_v32  ;;  %2868 = vmatpush3.bf16.msra.mxu1 %v3035_v59 }
 0x16c   : > { %2687 = vmatmul.mubr.msk.bf16.gmra.mrb[20].mxu0 %vm2685_vm6, %v2686_v27  ;;  %2869 = vmatprep.subr.bf16.mxu1 %v3036_v60 }
 0x16d   : > { %2892 = vmatpush3.bf16.msra.mxu0 %v3045_v61 }
 0x16e   : > { %2893 = vmatprep.subr.bf16.mxu0 %v3046_v62 }
 0x16f   : > { %2870 = vmatpush3.bf16.msra.mxu1 %v3036_v60 }
 0x170   : > { %2871 = vmatprep.subr.bf16.mxu1 %v3037_v28 }
 0x171   : > { %2894 = vmatpush3.bf16.msra.mxu0 %v3046_v62 }
 0x172   : > { %2121 = vmatmul.mubr.bf16.gmra.mrb[12].mxu1 %v2575_v36  ;;  %2895 = vmatprep.subr.bf16.mxu0 %v3047_v63 }
 0x173   : > { %2872 = vmatpush3.bf16.msra.mxu1 %v3037_v28  ;;  %2883 = vmatprep.mubr.bf16.mxu1 %v3645_v4 }
 0x174   : > { %2873 = vmatprep.subr.bf16.mxu1 %v3038_v41 }
 0x175   : > { %2896 = vmatpush3.bf16.msra.mxu0 %v3047_v63 }
 0x176   : > { %2897 = vmatprep.subr.bf16.mxu0 %v3048_v1 }
 0x177   : > { %2874 = vmatpush3.bf16.msra.mxu1 %v3038_v41 }
 0x178   : > { %2875 = vmatprep.subr.bf16.mxu1 %v3039_v53 }
 0x179   : > { %2898 = vmatpush3.bf16.msra.mxu0 %v3048_v1 }
 0x17a   : > { %2899 = vmatprep.subr.bf16.mxu0 %v3049_v37 }
 0x17b   : > { %2876 = vmatpush3.bf16.msra.mxu1 %v3039_v53 }
 0x17c   : > { %2877 = vmatprep.subr.bf16.mxu1 %v3040_v46 }
 0x17d   : > { %2900 = vmatpush3.bf16.msra.mxu0 %v3049_v37 }
 0x17e   : > { %2901 = vmatprep.subr.bf16.mxu0 %v3050_v2 }
 0x17f   : > { %2878 = vmatpush3.bf16.msra.mxu1 %v3040_v46 }
 0x180   : > { %2879 = vmatprep.subr.bf16.mxu1 %v3041_v29 }
 0x181   : > { %2902 = vmatpush3.bf16.msra.mxu0 %v3050_v2 }
 0x183   : > { %2880 = vmatpush3.bf16.msra.mxu1 %v3041_v29 }
 0x184   : > { %2881 = vmatprep.subr.bf16.mxu1 %v3042_v25 }
 0x187   : > { %2882 = vmatpush3.bf16.msra.mxu1 %v3042_v25 }
 0x18a   : > { %2884 = vmatmul.mubr.bf16.vlgmr.msra.gmra.mrb[16].mxu1 %v3669_v33 }
 0x215   : > { %v2755_v3 = vpop.f32.mrb[8].mxu0 }
 0x216   : > { %v2756_v4 = vpop.f32.mrb[9].mxu0 }
 0x217   : > { %v2757_v5 = vadd.f32 %v2756_v4, %v2755_v3  ;;  %v2758_v22 = vpop.f32.mrb[10].mxu0 }
 0x218   : > { %v2759_v7 = vpop.f32.mrb[11].mxu0 }
 0x219   : > { %v2760_v9 = vadd.f32 %v2759_v7, %v2758_v22 }
 0x21d   : > { %v2727_v10 = vpop.f32.mrb[0].mxu1  ;;  %v2761_v11 = vpop.f32.mrb[12].mxu0 }
 0x21e   : > { %v2728_v13 = vpop.f32.mrb[1].mxu1  ;;  %v2762_v14 = vpop.f32.mrb[13].mxu0 }
 0x21f   : > { %v2729_v15 = vadd.f32 %v2728_v13, %v2727_v10  ;;  %v2730_v16 = vpop.f32.mrb[2].mxu1  ;;  %v2763_v17 = vadd.f32 %v2762_v14, %v2761_v11  ;;  %v2764_v20 = vpop.f32.mrb[14].mxu0 }
 0x220   : > { %v2731_v21 = vpop.f32.mrb[3].mxu1  ;;  %v2765_v26 = vpop.f32.mrb[15].mxu0 }
 0x221   : > { %v2017_v27 = vadd.f32 %v2729_v15, %v2564_v12  ;;  %v2732_v30 = vadd.f32 %v2731_v21, %v2730_v16  ;;  %v2766_v54 = vadd.f32 %v2765_v26, %v2764_v20  ;;  %v3051_v21 = vld [vmem:[%s3277_s21 + $0x18] sm:$0xf] }
 0x222   : > { %v2281_v26 = vshrl.u32 %v3051_v21, 16 }
 0x223   : > { %v2020_v0 = vadd.f32 %v2732_v30, %v2564_v12  ;;  %v2066_v19 = vadd.f32 %v2757_v5, %v2017_v27  ;;  %v2284_v27 = vshll.u32 %v3051_v21, 16  ;;  %v3052_v30 = vld [vmem:[%s3277_s21 + $0x8] sm:$0xf] }
 0x225   : > { %v2733_v31 = vpop.f32.mrb[4].mxu1  ;;  %v2069_v32 = vadd.f32 %v2760_v9, %v2020_v0  ;;  %v2256_v0 = vshll.u32 %v3052_v30, 16 }
 0x226   : > { %v2734_v33 = vpop.f32.mrb[5].mxu1 }
 0x227   : > { %v2735_v48 = vadd.f32 %v2734_v33, %v2733_v31  ;;  %v2736_v23 = vpop.f32.mrb[6].mxu1  ;;  %v3054_v33 = vld [vmem:[%s3277_s21 + $0x10] sm:$0xf] }
 0x228   : > { %v2737_v34 = vpop.f32.mrb[7].mxu1 }
 0x229   : > { %v2025_v35 = vadd.f32 %v2735_v48, %v2564_v12  ;;  %v2738_v36 = vadd.f32 %v2737_v34, %v2736_v23  ;;  %v2267_v48 = vshrl.u32 %v3054_v33, 16  ;;  %v2270_v23 = vshll.u32 %v3054_v33, 16 }
 0x22a   : > { %v2283_v34 = vrot.slane %v2281_v26, 4 }
 0x22b   : > { %v2028_v38 = vadd.f32 %v2738_v36, %v2564_v12  ;;  %v2074_v18 = vadd.f32 %v2763_v17, %v2025_v35  ;;  %v2286_v35 = vrot.slane %v2284_v27, 5 }
 0x22d   : > { %v2077_v40 = vadd.f32 %v2766_v54, %v2028_v38  ;;  %v2253_v54 = vshrl.u32 %v3052_v30, 16  ;;  %v2258_v38 = vrot.slane %v2256_v0, 5 }
 0x22f   : > { %v2255_v36 = vrot.slane %v2253_v54, 4 }
 0x236   : > { %v2811_v42 = vpop.f32.mrb[16].mxu0 }
 0x237   : > { %v2812_v43 = vpop.f32.mrb[17].mxu0 }
 0x238   : > { %v2813_v45 = vadd.f32 %v2812_v43, %v2811_v42  ;;  %v2814_v47 = vpop.f32.mrb[18].mxu0  ;;  %v2269_v42 = vrot.slane %v2267_v48, 4  ;;  %v2272_v43 = vrot.slane %v2270_v23, 5 }
 0x239   : > { %v2815_v49 = vpop.f32.mrb[19].mxu0 }
 0x23a   : > { %v2816_v50 = vadd.f32 %v2815_v49, %v2814_v47  ;;  %v3055_v47 = vld [vmem:[%s3277_s21 + $0x1c] sm:$0x1] }
 0x23b   : > { %v2290_v49 = vshll.u32 %v3055_v47, 16 }
 0x23d   : > { %v2783_v51 = vpop.f32.mrb[8].mxu1 }
 0x23e   : > { %v2784_v52 = vpop.f32.mrb[9].mxu1 }
 0x23f   : > { %v2785_v55 = vadd.f32 %v2784_v52, %v2783_v51  ;;  %v2786_v24 = vpop.f32.mrb[10].mxu1  ;;  %v2817_v6 = vpop.f32.mrb[20].mxu0  ;;  %v3056_v51 = vld [vmem:[%s3277_s21 + $0xc] sm:$0x1] }
 0x240   : > { %v2787_v56 = vpop.f32.mrb[11].mxu1  ;;  %v2818_v57 = vpop.f32.mrb[21].mxu0  ;;  %v2262_v52 = vshll.u32 %v3056_v51, 16 }
 0x241   : > { %v2115_v58 = vadd.f32 %v2785_v55, %v2066_v19  ;;  %v2788_v44 = vadd.f32 %v2787_v56, %v2786_v24  ;;  %v2819_v59 = vadd.f32 %v2818_v57, %v2817_v6  ;;  %v2820_v60 = vpop.f32.mrb[22].mxu0  ;;  %v3053_v19 = vld [vmem:[%s3277_s21 + $0x20] sm:$0xf]  ;;  %v3057_v24 = vld [vmem:[%s3277_s21 + $0x24] sm:$0x1]  ;;  %v2273_v56 = vor.u32 %v2272_v43, %v2269_v42 }
 0x242   : > { %v2821_v28 = vpop.f32.mrb[23].mxu0  ;;  %v2295_v31 = vshrl.u32 %v3053_v19, 16  ;;  %v2304_v6 = vshll.u32 %v3057_v24, 16  ;;  %v3058_v57 = vld [vmem:[%s3277_s21 + $0x14] sm:$0x1] }
 0x243   : > { %v2118_v41 = vadd.f32 %v2788_v44, %v2069_v32  ;;  %v2822_v53 = vadd.f32 %v2821_v28, %v2820_v60  ;;  %v2164_v46 = vadd.f32 %v2813_v45, %v2115_v58  ;;  %v2298_v32 = vshll.u32 %v3053_v19, 16 }
 0x244   : > { %v2287_v45 = vor.u32 %v2286_v35, %v2283_v34  ;;  %v2276_v58 = vshll.u32 %v3058_v57, 16 }
 0x245   : > { %v2789_v29 = vpop.f32.mrb[12].mxu1  ;;  %v2167_v25 = vadd.f32 %v2816_v50, %v2118_v41  ;;  %v2259_v50 = vor.u32 %v2258_v38, %v2255_v36  ;;  %v2264_v41 = vrot.slane %v2262_v52, 5 }
 0x246   : > { %v2790_v8 = vpop.f32.mrb[13].mxu1  ;;  %v2288_v44 = vrot.slane %v2287_v45, 4 }
 0x247   : > { %v2791_v39 = vadd.f32 %v2790_v8, %v2789_v29  ;;  %v2792_v61 = vpop.f32.mrb[14].mxu1  ;;  %v2260_v28 = vrot.slane %v2259_v50, 4  ;;  %v2274_v29 = vrot.slane %v2273_v56, 4 }
 0x248   : > { %v2793_v62 = vpop.f32.mrb[15].mxu1 }
 0x249   : > { %v2123_v63 = vadd.f32 %v2791_v39, %v2074_v18  ;;  %v2794_v1 = vadd.f32 %v2793_v62, %v2792_v61  ;;  %v2297_v18 = vrot.slane %v2295_v31, 4  ;;  %v2265_v39 = vsel %vm3739_vm9, %v2260_v28, %v2264_v41  ;;  %v2652_v61 = vld [vmem:[%s3781_s6] ss:$0 sm:$0xff] }
 0x24b   : > { %v2126_v37 = vadd.f32 %v2794_v1, %v2077_v40  ;;  %v2172_v2 = vadd.f32 %v2819_v59, %v2123_v63  ;;  %v2300_v40 = vrot.slane %v2298_v32, 5  ;;  %v2292_v59 = vrot.slane %v2290_v49, 5 }
 0x24d   : > { %v2175_v3 = vadd.f32 %v2822_v53, %v2126_v37  ;;  %v2301_v55 = vor.u32 %v2300_v40, %v2297_v18  ;;  %v2293_v8 = vsel %vm3739_vm9, %v2288_v44, %v2292_v59 }
 0x24e   : > { %v2314_v63 = vunpack.c.l.bf16 %v2293_v8 }
 0x24f   : > { %v2302_v53 = vrot.slane %v2301_v55, 4 }
 0x25d   : > { %v2885_v4 = vpop.f32.mrb[16].mxu1 }
 0x25e   : > { %v2221_v5 = vadd.f32 %v2885_v4, %v2172_v2  ;;  %v2212_v22 = vpop.f32.mrb[17].mxu1  ;;  %v2312_v2 = vunpack.c.l.bf16 %v2265_v39 }
 0x25f   : > { %v2213_v7 = vadd.f32 %v2212_v22, %v2164_v46  ;;  %v2886_v9 = vpop.f32.mrb[18].mxu1  ;;  %v2306_v46 = vrot.slane %v2304_v6, 5 }
 0x260   : > { %v2224_v10 = vadd.f32 %v2886_v9, %v2175_v3  ;;  %v2215_v11 = vpop.f32.mrb[19].mxu1  ;;  %v2229_v13 = vmax.f32 %v2221_v5, 0.0 }
 0x261   : > { %v2216_v12 = vadd.f32 %v2215_v11, %v2167_v25  ;;  %v2227_v15 = vmax.f32 %v2213_v7, 0.0  ;;  %v2278_v25 = vrot.slane %v2276_v58, 5  ;;  %v2307_v62 = vsel %vm3739_vm9, %v2302_v53, %v2306_v46 }
 0x262   : > { %v2230_v14 = vmax.f32 %v2224_v10, 0.0  ;;  %v2315_v5 = vunpack.c.l.bf16 %v2307_v62 }
 0x263   : > { %v2228_v16 = vmax.f32 %v2216_v12, 0.0  ;;  %v2279_v1 = vsel %vm3739_vm9, %v2274_v29, %v2278_v25 }
 0x264   : > { %v2232_v17 = vpack.c.bf16 %v2230_v14, %v2229_v13  ;;  %v2313_v9 = vunpack.c.l.bf16 %v2279_v1 }
 0x265   : > { %v2231_v20 = vpack.c.bf16 %v2228_v16, %v2227_v15 }
 0x267   : > { %2903 = vmatprep.mubr.bf16.mxu0 %v2231_v20 }
 0x268   : > { %2904 = vmatmul.mubr.bf16.vlgmr.msra.gmra.mrb[24].mxu0 %v2232_v17 }
 0x33b   : > { %v2905_v37 = vpop.f32.mrb[24].mxu0 }
 0x33c   : > { %v2414_v3 = vadd.f32 %v2905_v37, %v2652_v61  ;;  %v2405_v4 = vpop.f32.mrb[25].mxu0 }
 0x33d   : > { %v2406_v22 = vadd.f32 %v2652_v61, %v2405_v4  ;;  %v2906_v7 = vpop.f32.mrb[26].mxu0 }
 0x33e   : > { %v2422_v10 = vadd.f32 %v2414_v3, %v2314_v63  ;;  %v2417_v11 = vadd.f32 %v2906_v7, %v2652_v61  ;;  %v2408_v12 = vpop.f32.mrb[27].mxu0 }
 0x33f   : > { %v2420_v13 = vadd.f32 %v2406_v22, %v2312_v2  ;;  %v2409_v14 = vadd.f32 %v2652_v61, %v2408_v12 }
 0x340   : > { %v2423_v15 = vadd.f32 %v2417_v11, %v2315_v5  ;;  %v2426_v17 = vmax.f32 %v2422_v10, 0.0 }
 0x341   : > { %v2421_v16 = vadd.f32 %v2409_v14, %v2313_v9  ;;  %v2424_v21 = vmax.f32 %v2420_v13, 0.0 }
 0x342   : > { %v2427_v20 = vmax.f32 %v2423_v15, 0.0 }
 0x343   : > { %v2425_v26 = vmax.f32 %v2421_v16, 0.0 }
 0x344   : > { %v2696_v27 = vpack.c.bf16 %v2427_v20, %v2426_v17 }
 0x345   : > { %v2691_v30 = vpack.c.bf16 %v2425_v26, %v2424_v21 }
 0x346   : > { %2698 = vst [vmem:[%s315_s13 + $0x8] sm:$0xff] %v2696_v27  }
 0x347   : > { %2692 = vst [vmem:[%s315_s13] sm:$0xff] %v2691_v30  }
 0x348 PF: > { %s18_s28 = sadd.s32 1, %s3137_s28   ;;  %s3827_s24 = smov %s3129_s26 }
 0x349   : > { %p15_p7 = scmp.ge.s32.totalorder %s18_s28, 6   ;;  %s3828_s25 = smov %s3133_s27 }
 0x34a   : > { %s3829_s26 = smov %s3832_s30  ;;  %s3830_s27 = smov %s3836_s8 }
 0x34b   :  { %17 = sbr.rel (!%p15_p7) target bundleno = 3 (0x3), region = 84 }
 0x352   :  { %2466 = vsyncpa [#allocation3], 1 }
 0x353   :  { %2468 = vsyncpa [#allocation3 + $0x1], 1 }

</bundles_post_ra>
